<compile_context>
chip_gen: v7x
topology: tpu7x:2x2x1
jax: 0.10.0
libtpu: 0.0.40
codegen_flags: <defaults>
</compile_context>

<pallas_src>
import jax
import jax.numpy as jnp
from jax.experimental import pallas as pl
from jax.experimental.pallas import tpu as pltpu

_LANE = 128


def _round_down_lane(x):
    return (x // _LANE) * _LANE


def _sublane_tile(dtype):
    """Sublane packing factor: 8 for 32-bit, 16 for 16-bit, 32 for 8-bit."""
    itemsize = jnp.dtype(dtype).itemsize
    return max(8, 32 // itemsize)


def _device_tuning():
    """Return (vmem_budget_bytes, vmem_limit_bytes, two_tensorcores)."""
    kind = ""
    try:
        kind = jax.devices()[0].device_kind.lower()
    except Exception:
        pass
    if "v7" in kind:
        # 64 MiB physical / 32 MiB scoped per TensorCore, 2 TCs per chip.
        return 20 * 2**20, 28 * 2**20, True
    if "v6" in kind:
        # 128 MiB physical; raise the scoped limit, plenty of headroom.
        return 28 * 2**20, 48 * 2**20, False
    if "v5" in kind:
        # v5e: 16 MiB default scoped VMEM -> stay well under it.
        return 10 * 2**20, 14 * 2**20, False
    # Unknown generation: conservative.
    return 10 * 2**20, 16 * 2**20, False


def _choose_tile(m, n, b, in_dtype, out_dtype, budget_bytes,
                 min_steps=4, even_steps=False):
    """Lane-dense (multiple-of-128) M tile whose *sublane-padded*,
    double-buffered VMEM footprint stays under `budget_bytes`, capped so the
    grid has at least `min_steps` steps when there is enough work."""
    if m <= _LANE:
        return m  # full-dim block (divisibility exemption)

    in_item = jnp.dtype(in_dtype).itemsize
    out_item = jnp.dtype(out_dtype).itemsize
    sub_in = _sublane_tile(in_dtype)
    sub_out = _sublane_tile(out_dtype)
    b_pad = ((b + sub_in - 1) // sub_in) * sub_in          # physical sublanes
    n_pad = ((n + sub_out - 1) // sub_out) * sub_out
    # N inputs x double-buffer x (b_pad, tm) + double-buffered (n_pad, tm) out.
    per_lane = n * 2 * b_pad * in_item + 2 * n_pad * out_item
    tm_vmem = max(_LANE, _round_down_lane(budget_bytes // per_lane))

    # Cap so the grid has >= min_steps steps (pipelining + megacore split),
    # but keep >= 512 lanes per tile to amortize per-step overhead.
    tm_steps = max(512, _round_down_lane(pl.cdiv(m, min_steps)))
    tm = min(tm_vmem, tm_steps, _round_down_lane(m))
    tm = max(_LANE, tm)

    if even_steps:
        steps = pl.cdiv(m, tm)
        if steps > 1 and steps % 2 == 1:
            # Nudge the tile down until the step count comes out even
            # (keeps both v7x TensorCores busy).
            for cand_steps in (steps + 1, steps + 3):
                cand = max(_LANE, _round_down_lane(pl.cdiv(m, cand_steps)))
                if pl.cdiv(m, cand) % 2 == 0:
                    tm = cand
                    break
    return tm


def _make_pool_kernel(n, pool_type, inv_b, out_dtype):
    def kernel(*refs):
        in_refs = refs[:n]
        o_ref = refs[n]
        for i, r in enumerate(in_refs):
            x = r[...]                                        # (B, tm) in VMEM
            if pool_type == "max":
                row = jnp.max(x, axis=0, keepdims=True)        # native dtype
            else:
                acc = jnp.sum(x.astype(jnp.float32), axis=0, keepdims=True)
                row = (acc * inv_b).astype(out_dtype)
            # Direct per-row store (static slice): no jnp.stack / sublane
            # insert work — the store slot does the assembly for free.
            o_ref[i:i + 1, :] = row.astype(o_ref.dtype)
    return kernel


def pooling(hidden_states, pool_type):
    """JAX/Pallas equivalent of Pooling(type).forward(hidden_states).

    hidden_states: sequence of arrays, each of identical shape (B, S, H).
    Returns an array of shape (N, S, H), N = len(hidden_states).
    """
    hidden_states = list(hidden_states)
    n = len(hidden_states)
    b, s, h = hidden_states[0].shape
    out_dtype = hidden_states[0].dtype
    m = s * h

    # Free (row-major) reshape: fold (S, H) into one lane-friendly axis.
    flat = [x.reshape(b, m) for x in hidden_states]
    in_dtype = flat[0].dtype

    budget_bytes, vmem_limit, two_cores = _device_tuning()
    tm = _choose_tile(m, n, b, in_dtype, out_dtype, budget_bytes,
                      min_steps=4, even_steps=two_cores)

    in_item = jnp.dtype(in_dtype).itemsize
    out_item = jnp.dtype(out_dtype).itemsize
    cost = pl.CostEstimate(
        flops=n * b * m,                                     # n reductions over B
        transcendentals=0,
        bytes_accessed=n * b * m * in_item + n * m * out_item,
    )

    kernel = _make_pool_kernel(n, pool_type, 1.0 / float(b), out_dtype)

    out_flat = pl.pallas_call(
        kernel,
        out_shape=jax.ShapeDtypeStruct((n, m), out_dtype),
        grid=(pl.cdiv(m, tm),),
        in_specs=[pl.BlockSpec((b, tm), lambda j: (0, j)) for _ in range(n)],
        out_specs=pl.BlockSpec((n, tm), lambda j: (0, j)),
        compiler_params=pltpu.CompilerParams(
            dimension_semantics=("parallel",),
            vmem_limit_bytes=vmem_limit,
        ),
        cost_estimate=cost,
    )(*flat)

    return out_flat.reshape(n, s, h)


class Pooling:
    """Thin functional mirror of the PyTorch module."""

    def __init__(self, type):
        self.type = type

    def __call__(self, hidden_states):
        return pooling(hidden_states, self.type)


if __name__ == "__main__":
    key = jax.random.PRNGKey(0)
    num_states = 4   # length of the hidden_states list (stack axis)
    batch = 2        # axis that gets reduced (dim 1 after stacking)
    seq = 8
    hidden = 32

    keys = jax.random.split(key, num_states)
    hidden_states = [
        jax.random.normal(k, (batch, seq, hidden), dtype=jnp.float32)
        for k in keys
    ]

    # Max pooling
    out_max = Pooling("max")(hidden_states)
    out_max = jax.block_until_ready(out_max)
    ref_max = jnp.max(jnp.stack(hidden_states), axis=1)
    assert out_max.shape == (num_states, seq, hidden)
    assert jnp.allclose(out_max, ref_max, atol=1e-6)

    # Mean pooling (any type != 'max')
    out_mean = Pooling("mean")(hidden_states)
    out_mean = jax.block_until_ready(out_mean)
    ref_mean = jnp.mean(jnp.stack(hidden_states), axis=1)
    assert out_mean.shape == (num_states, seq, hidden)
    assert jnp.allclose(out_mean, ref_mean, atol=1e-5)

    print("KERNEL_OK")
</pallas_src>

<mosaic_0001>
module attributes {stable_mosaic.version = 11 : i64} {
  func.func @kernel(%arg0: i32, %arg1: memref<2x256xf32, #tpu.memory_space<vmem>>, %arg2: memref<2x256xf32, #tpu.memory_space<vmem>>, %arg3: memref<2x256xf32, #tpu.memory_space<vmem>>, %arg4: memref<2x256xf32, #tpu.memory_space<vmem>>, %arg5: memref<4x256xf32, #tpu.memory_space<vmem>>) attributes {dimension_semantics = [#tpu.dimension_semantics<parallel>], iteration_bounds = array<i64: 1>, scalar_prefetch = 0 : i64, scratch_operands = 0 : i64, tpu.core_type = #tpu.core_type<tc>, window_params = [{transform_indices = @transform_0, window_bounds = array<i64: 2, 256>}, {transform_indices = @transform_1, window_bounds = array<i64: 2, 256>}, {transform_indices = @transform_2, window_bounds = array<i64: 2, 256>}, {transform_indices = @transform_3, window_bounds = array<i64: 2, 256>}, {transform_indices = @transform_4, window_bounds = array<i64: 4, 256>}]} {
    %c0 = arith.constant 0 : index
    %c0_0 = arith.constant 0 : index
    %0 = vector.load %arg1[%c0, %c0_0] : memref<2x256xf32, #tpu.memory_space<vmem>>, vector<2x256xf32>
    %cst = arith.constant dense<0xFF800000> : vector<256xf32>
    %1 = vector.multi_reduction <maximumf>, %0, %cst [0] : vector<2x256xf32> to vector<256xf32>
    %2 = vector.shape_cast %1 : vector<256xf32> to vector<1x256xf32>
    %c0_1 = arith.constant 0 : index
    %c0_2 = arith.constant 0 : index
    %3 = vector.load %arg5[%c0_1, %c0_2] : memref<4x256xf32, #tpu.memory_space<vmem>>, vector<1x256xf32>
    tpu.vector_store %arg5[%c0_1, %c0_2], %2 {strides = array<i32>} : memref<4x256xf32, #tpu.memory_space<vmem>>, vector<1x256xf32>,
    %c0_3 = arith.constant 0 : index
    %c0_4 = arith.constant 0 : index
    %4 = vector.load %arg2[%c0_3, %c0_4] : memref<2x256xf32, #tpu.memory_space<vmem>>, vector<2x256xf32>
    %cst_5 = arith.constant dense<0xFF800000> : vector<256xf32>
    %5 = vector.multi_reduction <maximumf>, %4, %cst_5 [0] : vector<2x256xf32> to vector<256xf32>
    %6 = vector.shape_cast %5 : vector<256xf32> to vector<1x256xf32>
    %c1 = arith.constant 1 : index
    %c0_6 = arith.constant 0 : index
    %7 = vector.load %arg5[%c1, %c0_6] : memref<4x256xf32, #tpu.memory_space<vmem>>, vector<1x256xf32>
    tpu.vector_store %arg5[%c1, %c0_6], %6 {strides = array<i32>} : memref<4x256xf32, #tpu.memory_space<vmem>>, vector<1x256xf32>,
    %c0_7 = arith.constant 0 : index
    %c0_8 = arith.constant 0 : index
    %8 = vector.load %arg3[%c0_7, %c0_8] : memref<2x256xf32, #tpu.memory_space<vmem>>, vector<2x256xf32>
    %cst_9 = arith.constant dense<0xFF800000> : vector<256xf32>
    %9 = vector.multi_reduction <maximumf>, %8, %cst_9 [0] : vector<2x256xf32> to vector<256xf32>
    %10 = vector.shape_cast %9 : vector<256xf32> to vector<1x256xf32>
    %c2 = arith.constant 2 : index
    %c0_10 = arith.constant 0 : index
    %11 = vector.load %arg5[%c2, %c0_10] : memref<4x256xf32, #tpu.memory_space<vmem>>, vector<1x256xf32>
    tpu.vector_store %arg5[%c2, %c0_10], %10 {strides = array<i32>} : memref<4x256xf32, #tpu.memory_space<vmem>>, vector<1x256xf32>,
    %c0_11 = arith.constant 0 : index
    %c0_12 = arith.constant 0 : index
    %12 = vector.load %arg4[%c0_11, %c0_12] : memref<2x256xf32, #tpu.memory_space<vmem>>, vector<2x256xf32>
    %cst_13 = arith.constant dense<0xFF800000> : vector<256xf32>
    %13 = vector.multi_reduction <maximumf>, %12, %cst_13 [0] : vector<2x256xf32> to vector<256xf32>
    %14 = vector.shape_cast %13 : vector<256xf32> to vector<1x256xf32>
    %c3 = arith.constant 3 : index
    %c0_14 = arith.constant 0 : index
    %15 = vector.load %arg5[%c3, %c0_14] : memref<4x256xf32, #tpu.memory_space<vmem>>, vector<1x256xf32>
    tpu.vector_store %arg5[%c3, %c0_14], %14 {strides = array<i32>} : memref<4x256xf32, #tpu.memory_space<vmem>>, vector<1x256xf32>,
    return
  }
  func.func @transform_0(%arg0: i32) -> (i32, i32) {
    %c0_i32 = arith.constant 0 : i32
    %c0_i32_0 = arith.constant 0 : i32
    return %c0_i32, %arg0 : i32, i32
  }
  func.func @transform_1(%arg0: i32) -> (i32, i32) {
    %c0_i32 = arith.constant 0 : i32
    %c0_i32_0 = arith.constant 0 : i32
    return %c0_i32, %arg0 : i32, i32
  }
  func.func @transform_2(%arg0: i32) -> (i32, i32) {
    %c0_i32 = arith.constant 0 : i32
    %c0_i32_0 = arith.constant 0 : i32
    return %c0_i32, %arg0 : i32, i32
  }
  func.func @transform_3(%arg0: i32) -> (i32, i32) {
    %c0_i32 = arith.constant 0 : i32
    %c0_i32_0 = arith.constant 0 : i32
    return %c0_i32, %arg0 : i32, i32
  }
  func.func @transform_4(%arg0: i32) -> (i32, i32) {
    %c0_i32 = arith.constant 0 : i32
    %c0_i32_0 = arith.constant 0 : i32
    return %c0_i32, %arg0 : i32, i32
  }
}

</mosaic_0001>

<bundles_post_ra>
// kernel: tpu_custom_call.1
= control target key start
LH: loop header
LB: loop body
LE: loop exit
PB: predicated region body
PF: predicated region fallthrough
CT: control target
= control target key end

     0   :  { %9 = vsyncpa [#allocation3], 0  ;;  %s419_s0 = inlined_call_operand.hbm [shape: f32[2,256], index: 0, kind: input, shape index: {}]   ;;  %s420_s1 = inlined_call_operand.hbm [shape: f32[2,256], index: 1, kind: input, shape index: {}]   ;;  %s421_s2 = inlined_call_operand.vmem [shape: f32[2,256], index: 2, kind: input, shape index: {}]   ;;  %s422_s3 = inlined_call_operand.vmem [shape: f32[2,256], index: 3, kind: input, shape index: {}]   ;;  %s423_s4 = inlined_call_operand.hbm [shape: f32[4,256], index: 4, kind: output, shape index: {}]  }
   0x1   :  { %10 = vsyncpa [#allocation6], 0 }
   0x2   :  { %11 = vsyncpa [#allocation4], 0  ;;  %s326_s15 = smov [#allocation2]   ;;  %s327_s17 = smov [#allocation5]  }
   0x3   :  { %s18_s16 = sshll.u32 %s326_s15, 4  ;;  %s28_s18 = sshll.u32 %s327_s17, 4  ;;  %s19_s16 = int_to_ptr.vmem [resolvable:$true] %s18_s16  ;;  %s29_s18 = int_to_ptr.vmem [resolvable:$true] %s28_s18 }
   0x4   :  { %s254_s21 = scalar_lea.hbm %s419_s0, 64 }
   0x5   :  { %p255_p0 = scmp.ne.s32.totalorder %s419_s0, %s254_s21  ;;  %p258_p1 = scmp.lt.u32.totalorder %s254_s21, %s419_s0 }
   0x7   :  { %p260_p2 = pnand %p258_p1, %p255_p0 }
   0x9   :  { %263 = shalt.err (!%p260_p2)
}
   0xa   :  { %s264_s26 = scalar_lea.vmem %s19_s16, 64  ;;  %p269_p4 = scmp.lt.s32.totalorder %s19_s16, %s19_s16 }
   0xb   :  { %p265_p3 = scmp.ne.s32.totalorder %s19_s16, %s264_s26  ;;  %p270_p5 = scmp.lt.s32.totalorder %s264_s26, %s264_s26 }
   0xd   :  { %p271_p6 = por %p270_p5, %p269_p4 }
   0xf   :  { %p272_p7 = pnand %p271_p6, %p265_p3 }
  0x11   :  { %275 = shalt.err (!%p272_p7)
}
  0x12   :  { %21 = dma.hbm_to_vmem [thread:$0]  %s419_s0, 64, %s19_s16, [#allocation3]  }
  0x13   :  { %s276_s5 = scalar_lea.hbm %s420_s1, 64 }
  0x14   :  { %p277_p8 = scmp.ne.s32.totalorder %s420_s1, %s276_s5  ;;  %p280_p9 = scmp.lt.u32.totalorder %s276_s5, %s420_s1 }
  0x16   :  { %p282_p10 = pnand %p280_p9, %p277_p8 }
  0x18   :  { %285 = shalt.err (!%p282_p10)
}
  0x19   :  { %s286_s10 = scalar_lea.vmem %s29_s18, 64  ;;  %p291_p12 = scmp.lt.s32.totalorder %s29_s18, %s29_s18 }
  0x1a   :  { %p287_p11 = scmp.ne.s32.totalorder %s29_s18, %s286_s10  ;;  %p292_p13 = scmp.lt.s32.totalorder %s286_s10, %s286_s10 }
  0x1c   :  { %p293_p0 = por %p292_p13, %p291_p12 }
  0x1e   :  { %p294_p1 = pnand %p293_p0, %p287_p11 }
  0x20   :  { %297 = shalt.err (!%p294_p1)
}
  0x21   :  { %31 = dma.hbm_to_vmem [thread:$0]  %s420_s1, 64, %s29_s18, [#allocation6]  }
  0x22   :  { %320 = dma.done.wait [#allocation3], 64  }
  0x23   :  { %321 = vsyncadd [#allocation3], 4294967232 }
  0x24   :  { %322 = dma.done.wait [#allocation6], 64  }
  0x25   :  { %323 = vsyncadd [#allocation6], 4294967232  ;;  %v75_v0 = vlaneseq  ;;  %vm54_vm0 = vcmask 1041408   ;;  %v328_v4 = vmov 1966171168  }
  0x26   :  { %v246_v1 = vld.sshfl [vmem:[#allocation2] sm:$0x33 pattern:$0x76325410]  ;;  %v73_v5 = vunpack.c.l.s4 %v328_v4 }
  0x27   :  { %v51_v2 = vcombine.high %v246_v1, %v246_v1  ;;  %v55_v3 = vsel %vm54_vm0, %v246_v1, -inf  ;;  %v76_v6 = vshrl.u32 %v75_v0, 7  ;;  %v247_v7 = vld.sshfl [vmem:[#allocation5] sm:$0x33 pattern:$0x76325410] }
  0x28   :  { %v56_v8 = vrot.slane %v55_v3, 4  ;;  %v101_v9 = vcombine.high %v247_v7, %v247_v7  ;;  %v104_v10 = vsel %vm54_vm0, %v247_v7, -inf  ;;  %v248_v11 = vld.sshfl [vmem:[%s421_s2] sm:$0x33 pattern:$0x76325410]  ;;  %v74_v20 = vunpack.c.0.s8 %v73_v5 }
  0x29   :  { %v62_v12 = vsel %vm54_vm0, %v51_v2, -inf  ;;  %v105_v13 = vrot.slane %v104_v10, 4  ;;  %v147_v14 = vcombine.high %v248_v11, %v248_v11  ;;  %v150_v15 = vsel %vm54_vm0, %v248_v11, -inf  ;;  %s329_s2 = smov [#allocation7]  }
  0x2a   :  { %v57_v16 = vmax.f32 %v55_v3, %v56_v8  ;;  %v63_v17 = vrot.slane %v62_v12, 4  ;;  %v111_v18 = vsel %vm54_vm0, %v101_v9, -inf  ;;  %v151_v19 = vrot.slane %v150_v15, 4 }
  0x2b   :  { %v106_v21 = vmax.f32 %v104_v10, %v105_v13  ;;  %v112_v22 = vrot.slane %v111_v18, 4  ;;  %v157_v23 = vsel %vm54_vm0, %v147_v14, -inf  ;;  %v249_v24 = vld.sshfl [vmem:[%s422_s3] sm:$0x33 pattern:$0x76325410]  ;;  %v77_v58 = vsub.s32 %v74_v20, %v76_v6 }
  0x2c   :  { %v58_v25 = vrot.slane %v57_v16, 2  ;;  %v64_v26 = vmax.f32 %v62_v12, %v63_v17  ;;  %v152_v27 = vmax.f32 %v150_v15, %v151_v19  ;;  %v158_v28 = vrot.slane %v157_v23, 4  ;;  %s236_s3 = sshll.u32 %s329_s2, 4  ;;  %s237_s3 = int_to_ptr.vmem [resolvable:$true] %s236_s3 }
  0x2d   :  { %v107_v29 = vrot.slane %v106_v21, 2  ;;  %v113_v30 = vmax.f32 %v111_v18, %v112_v22  ;;  %v193_v31 = vcombine.high %v249_v24, %v249_v24  ;;  %v196_v32 = vsel %vm54_vm0, %v249_v24, -inf  ;;  %s298_s15 = scalar_lea.vmem %s237_s3, 128  ;;  %p303_p3 = scmp.lt.s32.totalorder %s237_s3, %s237_s3 }
  0x2e   :  { %v59_v33 = vmax.f32 %v57_v16, %v58_v25  ;;  %v65_v34 = vrot.slane %v64_v26, 2  ;;  %v153_v35 = vrot.slane %v152_v27, 2  ;;  %v159_v36 = vmax.f32 %v157_v23, %v158_v28  ;;  %p299_p2 = scmp.ne.s32.totalorder %s237_s3, %s298_s15  ;;  %p304_p4 = scmp.lt.s32.totalorder %s298_s15, %s298_s15 }
  0x2f   :  { %v108_v37 = vmax.f32 %v106_v21, %v107_v29  ;;  %v114_v38 = vrot.slane %v113_v30, 2  ;;  %v197_v39 = vrot.slane %v196_v32, 4  ;;  %v203_v40 = vsel %vm54_vm0, %v193_v31, -inf }
  0x30   :  { %v60_v41 = vrot.slane %v59_v33, 1  ;;  %v66_v42 = vmax.f32 %v64_v26, %v65_v34  ;;  %v154_v43 = vmax.f32 %v152_v27, %v153_v35  ;;  %v160_v44 = vrot.slane %v159_v36, 2  ;;  %p305_p5 = por %p304_p4, %p303_p3 }
  0x31   :  { %v109_v45 = vrot.slane %v108_v37, 1  ;;  %v115_v46 = vmax.f32 %v113_v30, %v114_v38  ;;  %v198_v47 = vmax.f32 %v196_v32, %v197_v39  ;;  %v204_v48 = vrot.slane %v203_v40, 4 }
  0x32   :  { %v61_v49 = vmax.f32 %v59_v33, %v60_v41  ;;  %v67_v50 = vrot.slane %v66_v42, 1  ;;  %v155_v51 = vrot.slane %v154_v43, 1  ;;  %v161_v52 = vmax.f32 %v159_v36, %v160_v44  ;;  %p306_p6 = pnand %p305_p5, %p299_p2 }
  0x33   :  { %v110_v53 = vmax.f32 %v108_v37, %v109_v45  ;;  %v116_v54 = vrot.slane %v115_v46, 1  ;;  %v199_v55 = vrot.slane %v198_v47, 2  ;;  %v205_v56 = vmax.f32 %v203_v40, %v204_v48 }
  0x34   :  { %v68_v57 = vmax.f32 %v66_v42, %v67_v50  ;;  %v156_v59 = vmax.f32 %v154_v43, %v155_v51  ;;  %v162_v60 = vrot.slane %v161_v52, 1  ;;  %vm395_vm1 = vcmp.lt.s32.totalorder %v75_v0, 256 }
  0x35   :  { %v117_v61 = vmax.f32 %v115_v46, %v116_v54  ;;  %v200_v62 = vmax.f32 %v198_v47, %v199_v55  ;;  %v206_v63 = vrot.slane %v205_v56, 2 }
  0x36   :  { %v71_v1 = vcombine.low %v61_v49, %v68_v57  ;;  %v163_v2 = vmax.f32 %v161_v52, %v162_v60 }
  0x37   :  { %v120_v3 = vcombine.low %v110_v53, %v117_v61  ;;  %v201_v4 = vrot.slane %v200_v62, 1  ;;  %v207_v5 = vmax.f32 %v205_v56, %v206_v63 }
  0x38   :  { %v78_v7 = vrot.slane %v71_v1, %v77_v58  ;;  %v166_v8 = vcombine.low %v156_v59, %v163_v2 }
  0x39   :  { %v127_v10 = vrot.slane %v120_v3, %v77_v58  ;;  %v202_v11 = vmax.f32 %v200_v62, %v201_v4  ;;  %v208_v6 = vrot.slane %v207_v5, 1 }
  0x3a   :  { %v85_v12 = vrot.slane %v78_v7, %v77_v58  ;;  %v173_v13 = vrot.slane %v166_v8, %v77_v58 }
  0x3b   :  { %v134_v14 = vrot.slane %v127_v10, %v77_v58  ;;  %v209_v15 = vmax.f32 %v207_v5, %v208_v6 }
  0x3c   :  { %91 = vst.msk [vmem:[#allocation7] ss:$4 sm:$0x3] %vm395_vm1, %v85_v12  ;;  %v180_v16 = vrot.slane %v173_v13, %v77_v58 }
  0x3d   :  { %137 = vst.msk [vmem:[#allocation7 + $0x1] ss:$4 sm:$0x3] %vm395_vm1, %v134_v14  ;;  %v212_v17 = vcombine.low %v202_v11, %v209_v15 }
  0x3e   :  { %183 = vst.msk [vmem:[#allocation7 + $0x2] ss:$4 sm:$0x3] %vm395_vm1, %v180_v16 }
  0x3f   :  { %v219_v0 = vrot.slane %v212_v17, %v77_v58 }
  0x41   :  { %v226_v18 = vrot.slane %v219_v0, %v77_v58 }
  0x43   :  { %229 = vst.msk [vmem:[#allocation7 + $0x3] ss:$4 sm:$0x3] %vm395_vm1, %v226_v18 }
  0x44   :  { %309 = shalt.err (!%p306_p6)
}
  0x45   :  { %s310_s18 = scalar_lea.hbm %s423_s4, 128 }
  0x46   :  { %p311_p7 = scmp.ne.s32.totalorder %s423_s4, %s310_s18  ;;  %p314_p8 = scmp.lt.u32.totalorder %s310_s18, %s423_s4 }
  0x48   :  { %p316_p9 = pnand %p314_p8, %p311_p7 }
  0x4a   :  { %319 = shalt.err (!%p316_p9)
}
  0x4b   :  { %239 = dma.vmem_to_hbm [thread:$0]  %s237_s3, 128, %s423_s4, [#allocation4]  }
  0x4c   :  { %324 = dma.done.wait [#allocation4], 128  }
  0x4d   :  { %325 = vsyncadd [#allocation4], 4294967168 }
  0x4e   :  { %243 = vsyncpa [#allocation3], 1 }
  0x4f   :  { %244 = vsyncpa [#allocation6], 1 }
  0x50   :  { %245 = vsyncpa [#allocation4], 1 }

</bundles_post_ra>
